<compile_context>
chip_gen: v7x
topology: tpu7x:2x2x1
jax: 0.10.0
libtpu: 0.0.40
codegen_flags: <defaults>
</compile_context>

<pallas_src>
import math

import jax
import jax.numpy as jnp
from jax.experimental import pallas as pl
from jax.experimental.pallas import tpu as pltpu

SCORE_THRESH = 0.05
TO_REMOVE = 1.0
BBOX_XFORM_CLIP = math.log(1000.0 / 16.0)
BOX_WEIGHTS = (10.0, 10.0, 5.0, 5.0)        # default BoxCoder weights
QUAD_WEIGHT = 10.0                           # synthetic quad coder weight

INV_WX = 1.0 / BOX_WEIGHTS[0]
INV_WY = 1.0 / BOX_WEIGHTS[1]
INV_WW = 1.0 / BOX_WEIGHTS[2]
INV_WH = 1.0 / BOX_WEIGHTS[3]
INV_QW = 1.0 / QUAD_WEIGHT

LANE = 128
# Conservative double-buffered VMEM budget: fits v5e's 16 MiB default scoped
# VMEM and leaves headroom on v7x (64 MiB physical / 32 MiB default scoped).
_VMEM_BUDGET_BYTES = 12 * 1024 * 1024


def _postprocess_kernel(logits_ref, deltas_ref, qdeltas_ref, geom_ref,
                        probs_ref, keep_ref, boxes_ref, quads_ref):
    # ---------- softmax over classes (class axis = sublanes) ----------
    logits = logits_ref[...]                               # (C, tn)
    m = jnp.max(logits, axis=0, keepdims=True)
    e = jnp.exp(logits - m)
    denom = jnp.sum(e, axis=0, keepdims=True)
    probs = e * pl.reciprocal(denom, approx=True)          # EUP vrcp (free slot)
    probs_ref[...] = probs

    # score-threshold mask; background class (c == 0) is never selected
    cls_idx = jax.lax.broadcasted_iota(jnp.int32, probs.shape, dimension=0)
    keep_ref[...] = jnp.logical_and(probs > SCORE_THRESH,
                                    cls_idx > 0).astype(jnp.int8)

    # ---------- proposal geometry (broadcast over classes in-kernel) ----------
    # geom rows: 0..3 = proposal x1,y1,x2,y2 ; 4,5 = image w,h ; 6,7 = padding
    x1 = geom_ref[0:1, :]                                  # (1, tn)
    y1 = geom_ref[1:2, :]
    x2 = geom_ref[2:3, :]
    y2 = geom_ref[3:4, :]
    imw = geom_ref[4:5, :]
    imh = geom_ref[5:6, :]

    widths = x2 - x1 + TO_REMOVE
    heights = y2 - y1 + TO_REMOVE
    ctr_x = x1 + 0.5 * widths
    ctr_y = y1 + 0.5 * heights
    max_x = imw - TO_REMOVE
    max_y = imh - TO_REMOVE

    # Fold coder weights into the (1, tn) geometry vectors once per step so the
    # (C, tn) planes only see one fused mul-add each (saves ~12 plane vmuls).
    widths_x = widths * INV_WX
    heights_y = heights * INV_WY
    half_w = 0.5 * widths
    half_h = 0.5 * heights
    widths_q = widths * INV_QW
    heights_q = heights * INV_QW

    # ---------- BoxCoder.decode (weights 10,10,5,5) + clip_to_image ----------
    # deltas_ref is (4, C, tn): indexing the leading coordinate axis yields a
    # full lane-dense (C, tn) plane.
    pcx = deltas_ref[0] * widths_x + ctr_x                 # (C, tn)
    pcy = deltas_ref[1] * heights_y + ctr_y
    dw = jnp.minimum(deltas_ref[2] * INV_WW, BBOX_XFORM_CLIP)
    dh = jnp.minimum(deltas_ref[3] * INV_WH, BBOX_XFORM_CLIP)
    half_pw = jnp.exp(dw) * half_w                         # 0.5 * pw, hoisted
    half_ph = jnp.exp(dh) * half_h                         # 0.5 * ph, hoisted
    boxes_ref[0] = jnp.clip(pcx - half_pw, 0.0, max_x)
    boxes_ref[1] = jnp.clip(pcy - half_ph, 0.0, max_y)
    boxes_ref[2] = jnp.clip(pcx + half_pw - TO_REMOVE, 0.0, max_x)
    boxes_ref[3] = jnp.clip(pcy + half_ph - TO_REMOVE, 0.0, max_y)

    # ---------- quad box decode: offsets from proposal corners (TL,TR,BR,BL) --
    corner_x = (x1, x2, x2, x1)
    corner_y = (y1, y1, y2, y2)
    for k in range(4):                                     # unrolled, static
        quads_ref[2 * k] = jnp.clip(
            qdeltas_ref[2 * k] * widths_q + corner_x[k], 0.0, max_x)
        quads_ref[2 * k + 1] = jnp.clip(
            qdeltas_ref[2 * k + 1] * heights_q + corner_y[k], 0.0, max_y)


def postprocess_planar(logits_cn, deltas_4cn, qdeltas_8cn, geom_8n, *,
                       tile_n=512):
    """Hot path. All arrays are already planar, proposal axis last, padded to a
    multiple of 128 lanes:
        logits_cn   (C, Np)   f32  class logits
        deltas_4cn  (4, C, Np) f32 box regression (x,y,w,h coordinate planes)
        qdeltas_8cn (8, C, Np) f32 quad regression (8 corner-offset planes)
        geom_8n     (8, Np)   f32  rows 0..3 = proposal x1,y1,x2,y2,
                                   rows 4,5 = image w,h, rows 6,7 unused
    Returns planar outputs (padded lanes >= true N must be masked downstream):
        probs (C, Np) f32, keep (C, Np) int8,
        boxes (4, C, Np) f32, quads (8, C, Np) f32
    """
    C, n_pad = logits_cn.shape
    assert n_pad % LANE == 0, "proposal axis must be padded to a multiple of 128"

    # Lane-tile: largest LANE multiple that (a) divides Np, (b) respects the
    # VMEM budget (double-buffered I/O), (c) leaves >= 2 grid steps when the
    # problem is big enough so v7x megacore can split the lane axis.
    bytes_per_lane = 2 * (105 * C + 32)                    # double-buffered I/O
    cap_lanes = max(LANE, (_VMEM_BUDGET_BYTES // bytes_per_lane) // LANE * LANE)
    tn = max(LANE, (min(tile_n, n_pad, cap_lanes) // LANE) * LANE)
    while n_pad % tn:
        tn -= LANE
    if n_pad // tn < 2 and n_pad >= 2 * LANE:              # megacore: >=2 steps
        tn = min(tn, max(LANE, ((n_pad // 2) // LANE) * LANE))
        while n_pad % tn:
            tn -= LANE
    grid = (n_pad // tn,)

    return pl.pallas_call(
        _postprocess_kernel,
        out_shape=(
            jax.ShapeDtypeStruct((C, n_pad), jnp.float32),
            jax.ShapeDtypeStruct((C, n_pad), jnp.int8),
            jax.ShapeDtypeStruct((4, C, n_pad), jnp.float32),
            jax.ShapeDtypeStruct((8, C, n_pad), jnp.float32),
        ),
        grid=grid,
        in_specs=[
            pl.BlockSpec((C, tn), lambda i: (0, i)),
            pl.BlockSpec((4, C, tn), lambda i: (0, 0, i)),
            pl.BlockSpec((8, C, tn), lambda i: (0, 0, i)),
            pl.BlockSpec((8, tn), lambda i: (0, i)),
        ],
        out_specs=(
            pl.BlockSpec((C, tn), lambda i: (0, i)),
            pl.BlockSpec((C, tn), lambda i: (0, i)),
            pl.BlockSpec((4, C, tn), lambda i: (0, 0, i)),
            pl.BlockSpec((8, C, tn), lambda i: (0, 0, i)),
        ),
        compiler_params=pltpu.CompilerParams(dimension_semantics=("parallel",)),
    )(logits_cn, deltas_4cn, qdeltas_8cn, geom_8n)


def pack_planar_inputs(class_logits, box_regression, quad_box_regression,
                       concat_boxes, image_sizes_per_row):
    """Compat/test-only layout plumbing for callers holding row-major (N, ...)
    tensors.  In production the predictor head should emit the planar layout
    directly (and filter_results consume the planar outputs) so this transpose
    round-trip — a pure HBM read+write of the same bytes — is not on the hot
    path."""
    N, C = class_logits.shape
    n_pad = pl.cdiv(N, LANE) * LANE
    pad_n = n_pad - N
    logits_cn = jnp.pad(class_logits, ((0, pad_n), (0, 0))).T               # (C, Np)
    deltas_4cn = jnp.pad(box_regression.reshape(N, C, 4),
                         ((0, pad_n), (0, 0), (0, 0))).transpose(2, 1, 0)   # (4,C,Np)
    qdeltas_8cn = jnp.pad(quad_box_regression.reshape(N, C, 8),
                          ((0, pad_n), (0, 0), (0, 0))).transpose(2, 1, 0)  # (8,C,Np)
    props = jnp.pad(concat_boxes, ((0, pad_n), (0, 0))).T                   # (4, Np)
    imsz = jnp.pad(image_sizes_per_row, ((0, pad_n), (0, 0)),
                   constant_values=1.0).T                                   # (2, Np)
    geom_8n = jnp.concatenate(
        [props, imsz, jnp.zeros((2, n_pad), jnp.float32)], axis=0)          # (8, Np)
    return logits_cn, deltas_4cn, qdeltas_8cn, geom_8n


def _reference(class_logits, box_regression, quad_box_regression,
               concat_boxes, image_sizes_per_row):
    """Pure-JAX reference mirroring the PyTorch math (row-major layout)."""
    N, C = class_logits.shape
    probs = jax.nn.softmax(class_logits, -1)
    keep = jnp.logical_and(probs > SCORE_THRESH,
                           jnp.arange(C)[None, :] > 0).astype(jnp.int8)

    d = box_regression.reshape(N * C, 4)
    qd = quad_box_regression.reshape(N * C, 8)
    p = jnp.repeat(concat_boxes, C, axis=0)
    sz = jnp.repeat(image_sizes_per_row, C, axis=0)
    w = p[:, 2] - p[:, 0] + TO_REMOVE
    h = p[:, 3] - p[:, 1] + TO_REMOVE
    cx = p[:, 0] + 0.5 * w
    cy = p[:, 1] + 0.5 * h
    wx, wy, ww, wh = BOX_WEIGHTS
    dx, dy = d[:, 0] / wx, d[:, 1] / wy
    dw = jnp.minimum(d[:, 2] / ww, BBOX_XFORM_CLIP)
    dh = jnp.minimum(d[:, 3] / wh, BBOX_XFORM_CLIP)
    pcx, pcy = dx * w + cx, dy * h + cy
    pw, ph = jnp.exp(dw) * w, jnp.exp(dh) * h
    imw, imh = sz[:, 0], sz[:, 1]
    boxes = jnp.stack(
        [jnp.clip(pcx - 0.5 * pw, 0.0, imw - 1.0),
         jnp.clip(pcy - 0.5 * ph, 0.0, imh - 1.0),
         jnp.clip(pcx + 0.5 * pw - 1.0, 0.0, imw - 1.0),
         jnp.clip(pcy + 0.5 * ph - 1.0, 0.0, imh - 1.0)], axis=-1)

    corner_x = jnp.stack([p[:, 0], p[:, 2], p[:, 2], p[:, 0]], axis=-1)
    corner_y = jnp.stack([p[:, 1], p[:, 1], p[:, 3], p[:, 3]], axis=-1)
    px = jnp.clip(qd[:, 0::2] / QUAD_WEIGHT * w[:, None] + corner_x,
                  0.0, imw[:, None] - 1.0)
    py = jnp.clip(qd[:, 1::2] / QUAD_WEIGHT * h[:, None] + corner_y,
                  0.0, imh[:, None] - 1.0)
    quads = jnp.stack([px[:, 0], py[:, 0], px[:, 1], py[:, 1],
                       px[:, 2], py[:, 2], px[:, 3], py[:, 3]], axis=-1)
    return probs, keep, boxes.reshape(N, C * 4), quads.reshape(N, C * 8)


if __name__ == "__main__":
    key = jax.random.PRNGKey(0)
    k1, k2, k3, k4 = jax.random.split(key, 4)

    num_images, props_per_image, num_classes = 2, 8, 4
    N = num_images * props_per_image
    C = num_classes

    class_logits = jax.random.normal(k1, (N, C), jnp.float32)
    box_regression = 0.5 * jax.random.normal(k2, (N, C * 4), jnp.float32)
    quad_box_regression = 0.5 * jax.random.normal(k3, (N, C * 8), jnp.float32)

    # image sizes as (width, height), one per image; broadcast to per-proposal rows
    image_sizes = jnp.array([[64.0, 48.0], [80.0, 56.0]], jnp.float32)
    image_sizes_per_row = jnp.repeat(image_sizes, props_per_image, axis=0)   # (N, 2)

    # deterministic valid proposals (x1 < x2, y1 < y2, inside image)
    u = jax.random.uniform(k4, (N, 4), jnp.float32)
    imw = image_sizes_per_row[:, 0]
    imh = image_sizes_per_row[:, 1]
    x1 = u[:, 0] * 0.4 * imw
    y1 = u[:, 1] * 0.4 * imh
    x2 = x1 + 4.0 + u[:, 2] * 0.4 * imw
    y2 = y1 + 4.0 + u[:, 3] * 0.4 * imh
    concat_boxes = jnp.stack([x1, y1, x2, y2], axis=-1)

    # --- hot path: planar in, planar out (layout plumbing is test-only) ---
    planar_inputs = pack_planar_inputs(class_logits, box_regression,
                                       quad_box_regression, concat_boxes,
                                       image_sizes_per_row)
    probs_cn, keep_cn, boxes_4cn, quads_8cn = postprocess_planar(*planar_inputs)
    jax.block_until_ready((probs_cn, keep_cn, boxes_4cn, quads_8cn))

    # --- correctness check (row-major views, test-only transposes) ---
    probs = probs_cn.T[:N]                                      # (N, C)
    keep = keep_cn.T[:N]                                        # (N, C) int8
    boxes = boxes_4cn.transpose(2, 1, 0)[:N].reshape(N, C * 4)  # (N, C*4)
    quads = quads_8cn.transpose(2, 1, 0)[:N].reshape(N, C * 8)  # (N, C*8)

    ref_probs, ref_keep, ref_boxes, ref_quads = _reference(
        class_logits, box_regression, quad_box_regression,
        concat_boxes, image_sizes_per_row)

    # softmax uses the approximate EUP reciprocal -> slightly looser tolerance
    assert probs.shape == ref_probs.shape and probs.dtype == ref_probs.dtype
    assert jnp.allclose(probs, ref_probs, atol=5e-3, rtol=5e-3)
    # keep must be exactly consistent with the kernel's own probabilities
    # (approx reciprocal can legitimately flip entries sitting exactly at the
    #  threshold relative to the exact-softmax reference)
    self_keep = jnp.logical_and(probs > SCORE_THRESH,
                                jnp.arange(C)[None, :] > 0).astype(jnp.int8)
    assert keep.shape == ref_keep.shape and keep.dtype == ref_keep.dtype
    assert jnp.array_equal(keep, self_keep)
    # box / quad decode do not use the approximate reciprocal -> tight tolerance
    for got, want in ((boxes, ref_boxes), (quads, ref_quads)):
        assert got.shape == want.shape and got.dtype == want.dtype
        assert jnp.allclose(got, want, atol=1e-4, rtol=1e-4)

    print("KERNEL_OK")
</pallas_src>

<mosaic_0001>
module attributes {stable_mosaic.version = 11 : i64} {
  func.func @_postprocess_kernel(%arg0: i32, %arg1: memref<4x128xf32, #tpu.memory_space<vmem>>, %arg2: memref<4x4x128xf32, #tpu.memory_space<vmem>>, %arg3: memref<8x4x128xf32, #tpu.memory_space<vmem>>, %arg4: memref<8x128xf32, #tpu.memory_space<vmem>>, %arg5: memref<4x128xf32, #tpu.memory_space<vmem>>, %arg6: memref<4x128xi8, #tpu.memory_space<vmem>>, %arg7: memref<4x4x128xf32, #tpu.memory_space<vmem>>, %arg8: memref<8x4x128xf32, #tpu.memory_space<vmem>>) attributes {dimension_semantics = [#tpu.dimension_semantics<parallel>], iteration_bounds = array<i64: 1>, scalar_prefetch = 0 : i64, scratch_operands = 0 : i64, tpu.core_type = #tpu.core_type<tc>, window_params = [{transform_indices = @transform_0, window_bounds = array<i64: 4, 128>}, {transform_indices = @transform_1, window_bounds = array<i64: 4, 4, 128>}, {transform_indices = @transform_2, window_bounds = array<i64: 8, 4, 128>}, {transform_indices = @transform_3, window_bounds = array<i64: 8, 128>}, {transform_indices = @transform_4, window_bounds = array<i64: 4, 128>}, {transform_indices = @transform_5, window_bounds = array<i64: 4, 128>}, {transform_indices = @transform_6, window_bounds = array<i64: 4, 4, 128>}, {transform_indices = @transform_7, window_bounds = array<i64: 8, 4, 128>}]} {
    %c0 = arith.constant 0 : index
    %c0_0 = arith.constant 0 : index
    %0 = vector.load %arg1[%c0, %c0_0] : memref<4x128xf32, #tpu.memory_space<vmem>>, vector<4x128xf32>
    %cst = arith.constant dense<0xFF800000> : vector<128xf32>
    %1 = vector.multi_reduction <maximumf>, %0, %cst [0] : vector<4x128xf32> to vector<128xf32>
    %2 = vector.shape_cast %1 : vector<128xf32> to vector<1x128xf32>
    %3 = vector.broadcast %2 : vector<1x128xf32> to vector<4x128xf32>
    %4 = arith.subf %0, %3 : vector<4x128xf32>
    %5 = math.exp %4 : vector<4x128xf32>
    %cst_1 = arith.constant dense<0.000000e+00> : vector<128xf32>
    %6 = vector.multi_reduction <add>, %5, %cst_1 [0] : vector<4x128xf32> to vector<128xf32>
    %7 = vector.shape_cast %6 : vector<128xf32> to vector<1x128xf32>
    %8 = tpu.reciprocal %7 {approx = true} : vector<1x128xf32> -> vector<1x128xf32>
    %9 = vector.broadcast %8 : vector<1x128xf32> to vector<4x128xf32>
    %10 = arith.mulf %5, %9 : vector<4x128xf32>
    %c0_2 = arith.constant 0 : index
    %c0_3 = arith.constant 0 : index
    %11 = vector.load %arg5[%c0_2, %c0_3] : memref<4x128xf32, #tpu.memory_space<vmem>>, vector<4x128xf32>
    tpu.vector_store %arg5[%c0_2, %c0_3], %10 {strides = array<i32>} : memref<4x128xf32, #tpu.memory_space<vmem>>, vector<4x128xf32>,
    %12 = tpu.iota {dimensions = array<i32: 0>} : vector<4x128xi32>
    %cst_4 = arith.constant 5.000000e-02 : f32
    %13 = vector.broadcast %cst_4 : f32 to vector<4x128xf32>
    %14 = arith.cmpf ogt, %10, %13 : vector<4x128xf32>
    %c0_i32 = arith.constant 0 : i32
    %15 = vector.broadcast %c0_i32 : i32 to vector<4x128xi32>
    %16 = arith.cmpi sgt, %12, %15 : vector<4x128xi32>
    %17 = arith.andi %14, %16 : vector<4x128xi1>
    %18 = arith.extui %17 : vector<4x128xi1> to vector<4x128xi8>
    %c0_5 = arith.constant 0 : index
    %c0_6 = arith.constant 0 : index
    %19 = vector.load %arg6[%c0_5, %c0_6] : memref<4x128xi8, #tpu.memory_space<vmem>>, vector<4x128xi8>
    tpu.vector_store %arg6[%c0_5, %c0_6], %18 {strides = array<i32>} : memref<4x128xi8, #tpu.memory_space<vmem>>, vector<4x128xi8>,
    %c0_7 = arith.constant 0 : index
    %c0_8 = arith.constant 0 : index
    %20 = vector.load %arg4[%c0_7, %c0_8] : memref<8x128xf32, #tpu.memory_space<vmem>>, vector<1x128xf32>
    %c1 = arith.constant 1 : index
    %c0_9 = arith.constant 0 : index
    %21 = vector.load %arg4[%c1, %c0_9] : memref<8x128xf32, #tpu.memory_space<vmem>>, vector<1x128xf32>
    %c2 = arith.constant 2 : index
    %c0_10 = arith.constant 0 : index
    %22 = vector.load %arg4[%c2, %c0_10] : memref<8x128xf32, #tpu.memory_space<vmem>>, vector<1x128xf32>
    %c3 = arith.constant 3 : index
    %c0_11 = arith.constant 0 : index
    %23 = vector.load %arg4[%c3, %c0_11] : memref<8x128xf32, #tpu.memory_space<vmem>>, vector<1x128xf32>
    %c4 = arith.constant 4 : index
    %c0_12 = arith.constant 0 : index
    %24 = vector.load %arg4[%c4, %c0_12] : memref<8x128xf32, #tpu.memory_space<vmem>>, vector<1x128xf32>
    %c5 = arith.constant 5 : index
    %c0_13 = arith.constant 0 : index
    %25 = vector.load %arg4[%c5, %c0_13] : memref<8x128xf32, #tpu.memory_space<vmem>>, vector<1x128xf32>
    %26 = arith.subf %22, %20 : vector<1x128xf32>
    %cst_14 = arith.constant 1.000000e+00 : f32
    %27 = vector.broadcast %cst_14 : f32 to vector<1x128xf32>
    %28 = arith.addf %26, %27 : vector<1x128xf32>
    %29 = arith.subf %23, %21 : vector<1x128xf32>
    %cst_15 = arith.constant 1.000000e+00 : f32
    %30 = vector.broadcast %cst_15 : f32 to vector<1x128xf32>
    %31 = arith.addf %29, %30 : vector<1x128xf32>
    %cst_16 = arith.constant 5.000000e-01 : f32
    %32 = vector.broadcast %cst_16 : f32 to vector<1x128xf32>
    %33 = arith.mulf %32, %28 : vector<1x128xf32>
    %34 = arith.addf %20, %33 : vector<1x128xf32>
    %cst_17 = arith.constant 5.000000e-01 : f32
    %35 = vector.broadcast %cst_17 : f32 to vector<1x128xf32>
    %36 = arith.mulf %35, %31 : vector<1x128xf32>
    %37 = arith.addf %21, %36 : vector<1x128xf32>
    %cst_18 = arith.constant 1.000000e+00 : f32
    %38 = vector.broadcast %cst_18 : f32 to vector<1x128xf32>
    %39 = arith.subf %24, %38 : vector<1x128xf32>
    %cst_19 = arith.constant 1.000000e+00 : f32
    %40 = vector.broadcast %cst_19 : f32 to vector<1x128xf32>
    %41 = arith.subf %25, %40 : vector<1x128xf32>
    %cst_20 = arith.constant 1.000000e-01 : f32
    %42 = vector.broadcast %cst_20 : f32 to vector<1x128xf32>
    %43 = arith.mulf %28, %42 : vector<1x128xf32>
    %cst_21 = arith.constant 1.000000e-01 : f32
    %44 = vector.broadcast %cst_21 : f32 to vector<1x128xf32>
    %45 = arith.mulf %31, %44 : vector<1x128xf32>
    %cst_22 = arith.constant 5.000000e-01 : f32
    %46 = vector.broadcast %cst_22 : f32 to vector<1x128xf32>
    %47 = arith.mulf %46, %28 : vector<1x128xf32>
    %cst_23 = arith.constant 5.000000e-01 : f32
    %48 = vector.broadcast %cst_23 : f32 to vector<1x128xf32>
    %49 = arith.mulf %48, %31 : vector<1x128xf32>
    %cst_24 = arith.constant 1.000000e-01 : f32
    %50 = vector.broadcast %cst_24 : f32 to vector<1x128xf32>
    %51 = arith.mulf %28, %50 : vector<1x128xf32>
    %cst_25 = arith.constant 1.000000e-01 : f32
    %52 = vector.broadcast %cst_25 : f32 to vector<1x128xf32>
    %53 = arith.mulf %31, %52 : vector<1x128xf32>
    %c0_26 = arith.constant 0 : index
    %c0_27 = arith.constant 0 : index
    %c0_28 = arith.constant 0 : index
    %54 = vector.load %arg2[%c0_26, %c0_27, %c0_28] : memref<4x4x128xf32, #tpu.memory_space<vmem>>, vector<1x4x128xf32>
    %55 = vector.shape_cast %54 : vector<1x4x128xf32> to vector<4x128xf32>
    %56 = vector.broadcast %43 : vector<1x128xf32> to vector<4x128xf32>
    %57 = arith.mulf %55, %56 : vector<4x128xf32>
    %58 = vector.broadcast %34 : vector<1x128xf32> to vector<4x128xf32>
    %59 = arith.addf %57, %58 : vector<4x128xf32>
    %c1_29 = arith.constant 1 : index
    %c0_30 = arith.constant 0 : index
    %c0_31 = arith.constant 0 : index
    %60 = vector.load %arg2[%c1_29, %c0_30, %c0_31] : memref<4x4x128xf32, #tpu.memory_space<vmem>>, vector<1x4x128xf32>
    %61 = vector.shape_cast %60 : vector<1x4x128xf32> to vector<4x128xf32>
    %62 = vector.broadcast %45 : vector<1x128xf32> to vector<4x128xf32>
    %63 = arith.mulf %61, %62 : vector<4x128xf32>
    %64 = vector.broadcast %37 : vector<1x128xf32> to vector<4x128xf32>
    %65 = arith.addf %63, %64 : vector<4x128xf32>
    %c2_32 = arith.constant 2 : index
    %c0_33 = arith.constant 0 : index
    %c0_34 = arith.constant 0 : index
    %66 = vector.load %arg2[%c2_32, %c0_33, %c0_34] : memref<4x4x128xf32, #tpu.memory_space<vmem>>, vector<1x4x128xf32>
    %67 = vector.shape_cast %66 : vector<1x4x128xf32> to vector<4x128xf32>
    %cst_35 = arith.constant 2.000000e-01 : f32
    %68 = vector.broadcast %cst_35 : f32 to vector<4x128xf32>
    %69 = arith.mulf %67, %68 : vector<4x128xf32>
    %cst_36 = arith.constant 4.13516665 : f32
    %70 = vector.broadcast %cst_36 : f32 to vector<4x128xf32>
    %71 = arith.minimumf %69, %70 : vector<4x128xf32>
    %c3_37 = arith.constant 3 : index
    %c0_38 = arith.constant 0 : index
    %c0_39 = arith.constant 0 : index
    %72 = vector.load %arg2[%c3_37, %c0_38, %c0_39] : memref<4x4x128xf32, #tpu.memory_space<vmem>>, vector<1x4x128xf32>
    %73 = vector.shape_cast %72 : vector<1x4x128xf32> to vector<4x128xf32>
    %cst_40 = arith.constant 2.000000e-01 : f32
    %74 = vector.broadcast %cst_40 : f32 to vector<4x128xf32>
    %75 = arith.mulf %73, %74 : vector<4x128xf32>
    %cst_41 = arith.constant 4.13516665 : f32
    %76 = vector.broadcast %cst_41 : f32 to vector<4x128xf32>
    %77 = arith.minimumf %75, %76 : vector<4x128xf32>
    %78 = math.exp %71 : vector<4x128xf32>
    %79 = vector.broadcast %47 : vector<1x128xf32> to vector<4x128xf32>
    %80 = arith.mulf %78, %79 : vector<4x128xf32>
    %81 = math.exp %77 : vector<4x128xf32>
    %82 = vector.broadcast %49 : vector<1x128xf32> to vector<4x128xf32>
    %83 = arith.mulf %81, %82 : vector<4x128xf32>
    %84 = arith.subf %59, %80 : vector<4x128xf32>
    %cst_42 = arith.constant 0.000000e+00 : f32
    %85 = vector.broadcast %cst_42 : f32 to vector<4x128xf32>
    %86 = arith.maximumf %85, %84 : vector<4x128xf32>
    %87 = vector.broadcast %39 : vector<1x128xf32> to vector<4x128xf32>
    %88 = arith.minimumf %87, %86 : vector<4x128xf32>
    %c0_43 = arith.constant 0 : index
    %c0_44 = arith.constant 0 : index
    %c0_45 = arith.constant 0 : index
    %89 = vector.load %arg7[%c0_43, %c0_44, %c0_45] : memref<4x4x128xf32, #tpu.memory_space<vmem>>, vector<1x4x128xf32>
    %90 = vector.shape_cast %89 : vector<1x4x128xf32> to vector<4x128xf32>
    %91 = vector.shape_cast %88 : vector<4x128xf32> to vector<1x4x128xf32>
    tpu.vector_store %arg7[%c0_43, %c0_44, %c0_45], %91 {strides = array<i32>} : memref<4x4x128xf32, #tpu.memory_space<vmem>>, vector<1x4x128xf32>,
    %92 = arith.subf %65, %83 : vector<4x128xf32>
    %cst_46 = arith.constant 0.000000e+00 : f32
    %93 = vector.broadcast %cst_46 : f32 to vector<4x128xf32>
    %94 = arith.maximumf %93, %92 : vector<4x128xf32>
    %95 = vector.broadcast %41 : vector<1x128xf32> to vector<4x128xf32>
    %96 = arith.minimumf %95, %94 : vector<4x128xf32>
    %c1_47 = arith.constant 1 : index
    %c0_48 = arith.constant 0 : index
    %c0_49 = arith.constant 0 : index
    %97 = vector.load %arg7[%c1_47, %c0_48, %c0_49] : memref<4x4x128xf32, #tpu.memory_space<vmem>>, vector<1x4x128xf32>
    %98 = vector.shape_cast %97 : vector<1x4x128xf32> to vector<4x128xf32>
    %99 = vector.shape_cast %96 : vector<4x128xf32> to vector<1x4x128xf32>
    tpu.vector_store %arg7[%c1_47, %c0_48, %c0_49], %99 {strides = array<i32>} : memref<4x4x128xf32, #tpu.memory_space<vmem>>, vector<1x4x128xf32>,
    %100 = arith.addf %59, %80 : vector<4x128xf32>
    %cst_50 = arith.constant 1.000000e+00 : f32
    %101 = vector.broadcast %cst_50 : f32 to vector<4x128xf32>
    %102 = arith.subf %100, %101 : vector<4x128xf32>
    %cst_51 = arith.constant 0.000000e+00 : f32
    %103 = vector.broadcast %cst_51 : f32 to vector<4x128xf32>
    %104 = arith.maximumf %103, %102 : vector<4x128xf32>
    %105 = vector.broadcast %39 : vector<1x128xf32> to vector<4x128xf32>
    %106 = arith.minimumf %105, %104 : vector<4x128xf32>
    %c2_52 = arith.constant 2 : index
    %c0_53 = arith.constant 0 : index
    %c0_54 = arith.constant 0 : index
    %107 = vector.load %arg7[%c2_52, %c0_53, %c0_54] : memref<4x4x128xf32, #tpu.memory_space<vmem>>, vector<1x4x128xf32>
    %108 = vector.shape_cast %107 : vector<1x4x128xf32> to vector<4x128xf32>
    %109 = vector.shape_cast %106 : vector<4x128xf32> to vector<1x4x128xf32>
    tpu.vector_store %arg7[%c2_52, %c0_53, %c0_54], %109 {strides = array<i32>} : memref<4x4x128xf32, #tpu.memory_space<vmem>>, vector<1x4x128xf32>,
    %110 = arith.addf %65, %83 : vector<4x128xf32>
    %cst_55 = arith.constant 1.000000e+00 : f32
    %111 = vector.broadcast %cst_55 : f32 to vector<4x128xf32>
    %112 = arith.subf %110, %111 : vector<4x128xf32>
    %cst_56 = arith.constant 0.000000e+00 : f32
    %113 = vector.broadcast %cst_56 : f32 to vector<4x128xf32>
    %114 = arith.maximumf %113, %112 : vector<4x128xf32>
    %115 = vector.broadcast %41 : vector<1x128xf32> to vector<4x128xf32>
    %116 = arith.minimumf %115, %114 : vector<4x128xf32>
    %c3_57 = arith.constant 3 : index
    %c0_58 = arith.constant 0 : index
    %c0_59 = arith.constant 0 : index
    %117 = vector.load %arg7[%c3_57, %c0_58, %c0_59] : memref<4x4x128xf32, #tpu.memory_space<vmem>>, vector<1x4x128xf32>
    %118 = vector.shape_cast %117 : vector<1x4x128xf32> to vector<4x128xf32>
    %119 = vector.shape_cast %116 : vector<4x128xf32> to vector<1x4x128xf32>
    tpu.vector_store %arg7[%c3_57, %c0_58, %c0_59], %119 {strides = array<i32>} : memref<4x4x128xf32, #tpu.memory_space<vmem>>, vector<1x4x128xf32>,
    %c0_60 = arith.constant 0 : index
    %c0_61 = arith.constant 0 : index
    %c0_62 = arith.constant 0 : index
    %120 = vector.load %arg3[%c0_60, %c0_61, %c0_62] : memref<8x4x128xf32, #tpu.memory_space<vmem>>, vector<1x4x128xf32>
    %121 = vector.shape_cast %120 : vector<1x4x128xf32> to vector<4x128xf32>
    %122 = vector.broadcast %51 : vector<1x128xf32> to vector<4x128xf32>
    %123 = arith.mulf %121, %122 : vector<4x128xf32>
    %124 = vector.broadcast %20 : vector<1x128xf32> to vector<4x128xf32>
    %125 = arith.addf %123, %124 : vector<4x128xf32>
    %cst_63 = arith.constant 0.000000e+00 : f32
    %126 = vector.broadcast %cst_63 : f32 to vector<4x128xf32>
    %127 = arith.maximumf %126, %125 : vector<4x128xf32>
    %128 = vector.broadcast %39 : vector<1x128xf32> to vector<4x128xf32>
    %129 = arith.minimumf %128, %127 : vector<4x128xf32>
    %c0_64 = arith.constant 0 : index
    %c0_65 = arith.constant 0 : index
    %c0_66 = arith.constant 0 : index
    %130 = vector.load %arg8[%c0_64, %c0_65, %c0_66] : memref<8x4x128xf32, #tpu.memory_space<vmem>>, vector<1x4x128xf32>
    %131 = vector.shape_cast %130 : vector<1x4x128xf32> to vector<4x128xf32>
    %132 = vector.shape_cast %129 : vector<4x128xf32> to vector<1x4x128xf32>
    tpu.vector_store %arg8[%c0_64, %c0_65, %c0_66], %132 {strides = array<i32>} : memref<8x4x128xf32, #tpu.memory_space<vmem>>, vector<1x4x128xf32>,
    %c1_67 = arith.constant 1 : index
    %c0_68 = arith.constant 0 : index
    %c0_69 = arith.constant 0 : index
    %133 = vector.load %arg3[%c1_67, %c0_68, %c0_69] : memref<8x4x128xf32, #tpu.memory_space<vmem>>, vector<1x4x128xf32>
    %134 = vector.shape_cast %133 : vector<1x4x128xf32> to vector<4x128xf32>
    %135 = vector.broadcast %53 : vector<1x128xf32> to vector<4x128xf32>
    %136 = arith.mulf %134, %135 : vector<4x128xf32>
    %137 = vector.broadcast %21 : vector<1x128xf32> to vector<4x128xf32>
    %138 = arith.addf %136, %137 : vector<4x128xf32>
    %cst_70 = arith.constant 0.000000e+00 : f32
    %139 = vector.broadcast %cst_70 : f32 to vector<4x128xf32>
    %140 = arith.maximumf %139, %138 : vector<4x128xf32>
    %141 = vector.broadcast %41 : vector<1x128xf32> to vector<4x128xf32>
    %142 = arith.minimumf %141, %140 : vector<4x128xf32>
    %c1_71 = arith.constant 1 : index
    %c0_72 = arith.constant 0 : index
    %c0_73 = arith.constant 0 : index
    %143 = vector.load %arg8[%c1_71, %c0_72, %c0_73] : memref<8x4x128xf32, #tpu.memory_space<vmem>>, vector<1x4x128xf32>
    %144 = vector.shape_cast %143 : vector<1x4x128xf32> to vector<4x128xf32>
    %145 = vector.shape_cast %142 : vector<4x128xf32> to vector<1x4x128xf32>
    tpu.vector_store %arg8[%c1_71, %c0_72, %c0_73], %145 {strides = array<i32>} : memref<8x4x128xf32, #tpu.memory_space<vmem>>, vector<1x4x128xf32>,
    %c2_74 = arith.constant 2 : index
    %c0_75 = arith.constant 0 : index
    %c0_76 = arith.constant 0 : index
    %146 = vector.load %arg3[%c2_74, %c0_75, %c0_76] : memref<8x4x128xf32, #tpu.memory_space<vmem>>, vector<1x4x128xf32>
    %147 = vector.shape_cast %146 : vector<1x4x128xf32> to vector<4x128xf32>
    %148 = vector.broadcast %51 : vector<1x128xf32> to vector<4x128xf32>
    %149 = arith.mulf %147, %148 : vector<4x128xf32>
    %150 = vector.broadcast %22 : vector<1x128xf32> to vector<4x128xf32>
    %151 = arith.addf %149, %150 : vector<4x128xf32>
    %cst_77 = arith.constant 0.000000e+00 : f32
    %152 = vector.broadcast %cst_77 : f32 to vector<4x128xf32>
    %153 = arith.maximumf %152, %151 : vector<4x128xf32>
    %154 = vector.broadcast %39 : vector<1x128xf32> to vector<4x128xf32>
    %155 = arith.minimumf %154, %153 : vector<4x128xf32>
    %c2_78 = arith.constant 2 : index
    %c0_79 = arith.constant 0 : index
    %c0_80 = arith.constant 0 : index
    %156 = vector.load %arg8[%c2_78, %c0_79, %c0_80] : memref<8x4x128xf32, #tpu.memory_space<vmem>>, vector<1x4x128xf32>
    %157 = vector.shape_cast %156 : vector<1x4x128xf32> to vector<4x128xf32>
    %158 = vector.shape_cast %155 : vector<4x128xf32> to vector<1x4x128xf32>
    tpu.vector_store %arg8[%c2_78, %c0_79, %c0_80], %158 {strides = array<i32>} : memref<8x4x128xf32, #tpu.memory_space<vmem>>, vector<1x4x128xf32>,
    %c3_81 = arith.constant 3 : index
    %c0_82 = arith.constant 0 : index
    %c0_83 = arith.constant 0 : index
    %159 = vector.load %arg3[%c3_81, %c0_82, %c0_83] : memref<8x4x128xf32, #tpu.memory_space<vmem>>, vector<1x4x128xf32>
    %160 = vector.shape_cast %159 : vector<1x4x128xf32> to vector<4x128xf32>
    %161 = vector.broadcast %53 : vector<1x128xf32> to vector<4x128xf32>
    %162 = arith.mulf %160, %161 : vector<4x128xf32>
    %163 = vector.broadcast %21 : vector<1x128xf32> to vector<4x128xf32>
    %164 = arith.addf %162, %163 : vector<4x128xf32>
    %cst_84 = arith.constant 0.000000e+00 : f32
    %165 = vector.broadcast %cst_84 : f32 to vector<4x128xf32>
    %166 = arith.maximumf %165, %164 : vector<4x128xf32>
    %167 = vector.broadcast %41 : vector<1x128xf32> to vector<4x128xf32>
    %168 = arith.minimumf %167, %166 : vector<4x128xf32>
    %c3_85 = arith.constant 3 : index
    %c0_86 = arith.constant 0 : index
    %c0_87 = arith.constant 0 : index
    %169 = vector.load %arg8[%c3_85, %c0_86, %c0_87] : memref<8x4x128xf32, #tpu.memory_space<vmem>>, vector<1x4x128xf32>
    %170 = vector.shape_cast %169 : vector<1x4x128xf32> to vector<4x128xf32>
    %171 = vector.shape_cast %168 : vector<4x128xf32> to vector<1x4x128xf32>
    tpu.vector_store %arg8[%c3_85, %c0_86, %c0_87], %171 {strides = array<i32>} : memref<8x4x128xf32, #tpu.memory_space<vmem>>, vector<1x4x128xf32>,
    %c4_88 = arith.constant 4 : index
    %c0_89 = arith.constant 0 : index
    %c0_90 = arith.constant 0 : index
    %172 = vector.load %arg3[%c4_88, %c0_89, %c0_90] : memref<8x4x128xf32, #tpu.memory_space<vmem>>, vector<1x4x128xf32>
    %173 = vector.shape_cast %172 : vector<1x4x128xf32> to vector<4x128xf32>
    %174 = vector.broadcast %51 : vector<1x128xf32> to vector<4x128xf32>
    %175 = arith.mulf %173, %174 : vector<4x128xf32>
    %176 = vector.broadcast %22 : vector<1x128xf32> to vector<4x128xf32>
    %177 = arith.addf %175, %176 : vector<4x128xf32>
    %cst_91 = arith.constant 0.000000e+00 : f32
    %178 = vector.broadcast %cst_91 : f32 to vector<4x128xf32>
    %179 = arith.maximumf %178, %177 : vector<4x128xf32>
    %180 = vector.broadcast %39 : vector<1x128xf32> to vector<4x128xf32>
    %181 = arith.minimumf %180, %179 : vector<4x128xf32>
    %c4_92 = arith.constant 4 : index
    %c0_93 = arith.constant 0 : index
    %c0_94 = arith.constant 0 : index
    %182 = vector.load %arg8[%c4_92, %c0_93, %c0_94] : memref<8x4x128xf32, #tpu.memory_space<vmem>>, vector<1x4x128xf32>
    %183 = vector.shape_cast %182 : vector<1x4x128xf32> to vector<4x128xf32>
    %184 = vector.shape_cast %181 : vector<4x128xf32> to vector<1x4x128xf32>
    tpu.vector_store %arg8[%c4_92, %c0_93, %c0_94], %184 {strides = array<i32>} : memref<8x4x128xf32, #tpu.memory_space<vmem>>, vector<1x4x128xf32>,
    %c5_95 = arith.constant 5 : index
    %c0_96 = arith.constant 0 : index
    %c0_97 = arith.constant 0 : index
    %185 = vector.load %arg3[%c5_95, %c0_96, %c0_97] : memref<8x4x128xf32, #tpu.memory_space<vmem>>, vector<1x4x128xf32>
    %186 = vector.shape_cast %185 : vector<1x4x128xf32> to vector<4x128xf32>
    %187 = vector.broadcast %53 : vector<1x128xf32> to vector<4x128xf32>
    %188 = arith.mulf %186, %187 : vector<4x128xf32>
    %189 = vector.broadcast %23 : vector<1x128xf32> to vector<4x128xf32>
    %190 = arith.addf %188, %189 : vector<4x128xf32>
    %cst_98 = arith.constant 0.000000e+00 : f32
    %191 = vector.broadcast %cst_98 : f32 to vector<4x128xf32>
    %192 = arith.maximumf %191, %190 : vector<4x128xf32>
    %193 = vector.broadcast %41 : vector<1x128xf32> to vector<4x128xf32>
    %194 = arith.minimumf %193, %192 : vector<4x128xf32>
    %c5_99 = arith.constant 5 : index
    %c0_100 = arith.constant 0 : index
    %c0_101 = arith.constant 0 : index
    %195 = vector.load %arg8[%c5_99, %c0_100, %c0_101] : memref<8x4x128xf32, #tpu.memory_space<vmem>>, vector<1x4x128xf32>
    %196 = vector.shape_cast %195 : vector<1x4x128xf32> to vector<4x128xf32>
    %197 = vector.shape_cast %194 : vector<4x128xf32> to vector<1x4x128xf32>
    tpu.vector_store %arg8[%c5_99, %c0_100, %c0_101], %197 {strides = array<i32>} : memref<8x4x128xf32, #tpu.memory_space<vmem>>, vector<1x4x128xf32>,
    %c6 = arith.constant 6 : index
    %c0_102 = arith.constant 0 : index
    %c0_103 = arith.constant 0 : index
    %198 = vector.load %arg3[%c6, %c0_102, %c0_103] : memref<8x4x128xf32, #tpu.memory_space<vmem>>, vector<1x4x128xf32>
    %199 = vector.shape_cast %198 : vector<1x4x128xf32> to vector<4x128xf32>
    %200 = vector.broadcast %51 : vector<1x128xf32> to vector<4x128xf32>
    %201 = arith.mulf %199, %200 : vector<4x128xf32>
    %202 = vector.broadcast %20 : vector<1x128xf32> to vector<4x128xf32>
    %203 = arith.addf %201, %202 : vector<4x128xf32>
    %cst_104 = arith.constant 0.000000e+00 : f32
    %204 = vector.broadcast %cst_104 : f32 to vector<4x128xf32>
    %205 = arith.maximumf %204, %203 : vector<4x128xf32>
    %206 = vector.broadcast %39 : vector<1x128xf32> to vector<4x128xf32>
    %207 = arith.minimumf %206, %205 : vector<4x128xf32>
    %c6_105 = arith.constant 6 : index
    %c0_106 = arith.constant 0 : index
    %c0_107 = arith.constant 0 : index
    %208 = vector.load %arg8[%c6_105, %c0_106, %c0_107] : memref<8x4x128xf32, #tpu.memory_space<vmem>>, vector<1x4x128xf32>
    %209 = vector.shape_cast %208 : vector<1x4x128xf32> to vector<4x128xf32>
    %210 = vector.shape_cast %207 : vector<4x128xf32> to vector<1x4x128xf32>
    tpu.vector_store %arg8[%c6_105, %c0_106, %c0_107], %210 {strides = array<i32>} : memref<8x4x128xf32, #tpu.memory_space<vmem>>, vector<1x4x128xf32>,
    %c7 = arith.constant 7 : index
    %c0_108 = arith.constant 0 : index
    %c0_109 = arith.constant 0 : index
    %211 = vector.load %arg3[%c7, %c0_108, %c0_109] : memref<8x4x128xf32, #tpu.memory_space<vmem>>, vector<1x4x128xf32>
    %212 = vector.shape_cast %211 : vector<1x4x128xf32> to vector<4x128xf32>
    %213 = vector.broadcast %53 : vector<1x128xf32> to vector<4x128xf32>
    %214 = arith.mulf %212, %213 : vector<4x128xf32>
    %215 = vector.broadcast %23 : vector<1x128xf32> to vector<4x128xf32>
    %216 = arith.addf %214, %215 : vector<4x128xf32>
    %cst_110 = arith.constant 0.000000e+00 : f32
    %217 = vector.broadcast %cst_110 : f32 to vector<4x128xf32>
    %218 = arith.maximumf %217, %216 : vector<4x128xf32>
    %219 = vector.broadcast %41 : vector<1x128xf32> to vector<4x128xf32>
    %220 = arith.minimumf %219, %218 : vector<4x128xf32>
    %c7_111 = arith.constant 7 : index
    %c0_112 = arith.constant 0 : index
    %c0_113 = arith.constant 0 : index
    %221 = vector.load %arg8[%c7_111, %c0_112, %c0_113] : memref<8x4x128xf32, #tpu.memory_space<vmem>>, vector<1x4x128xf32>
    %222 = vector.shape_cast %221 : vector<1x4x128xf32> to vector<4x128xf32>
    %223 = vector.shape_cast %220 : vector<4x128xf32> to vector<1x4x128xf32>
    tpu.vector_store %arg8[%c7_111, %c0_112, %c0_113], %223 {strides = array<i32>} : memref<8x4x128xf32, #tpu.memory_space<vmem>>, vector<1x4x128xf32>,
    return
  }
  func.func @transform_0(%arg0: i32) -> (i32, i32) {
    %c0_i32 = arith.constant 0 : i32
    %c0_i32_0 = arith.constant 0 : i32
    return %c0_i32, %arg0 : i32, i32
  }
  func.func @transform_1(%arg0: i32) -> (i32, i32, i32) {
    %c0_i32 = arith.constant 0 : i32
    %c0_i32_0 = arith.constant 0 : i32
    %c0_i32_1 = arith.constant 0 : i32
    return %c0_i32, %c0_i32_0, %arg0 : i32, i32, i32
  }
  func.func @transform_2(%arg0: i32) -> (i32, i32, i32) {
    %c0_i32 = arith.constant 0 : i32
    %c0_i32_0 = arith.constant 0 : i32
    %c0_i32_1 = arith.constant 0 : i32
    return %c0_i32, %c0_i32_0, %arg0 : i32, i32, i32
  }
  func.func @transform_3(%arg0: i32) -> (i32, i32) {
    %c0_i32 = arith.constant 0 : i32
    %c0_i32_0 = arith.constant 0 : i32
    return %c0_i32, %arg0 : i32, i32
  }
  func.func @transform_4(%arg0: i32) -> (i32, i32) {
    %c0_i32 = arith.constant 0 : i32
    %c0_i32_0 = arith.constant 0 : i32
    return %c0_i32, %arg0 : i32, i32
  }
  func.func @transform_5(%arg0: i32) -> (i32, i32) {
    %c0_i32 = arith.constant 0 : i32
    %c0_i32_0 = arith.constant 0 : i32
    return %c0_i32, %arg0 : i32, i32
  }
  func.func @transform_6(%arg0: i32) -> (i32, i32, i32) {
    %c0_i32 = arith.constant 0 : i32
    %c0_i32_0 = arith.constant 0 : i32
    %c0_i32_1 = arith.constant 0 : i32
    return %c0_i32, %c0_i32_0, %arg0 : i32, i32, i32
  }
  func.func @transform_7(%arg0: i32) -> (i32, i32, i32) {
    %c0_i32 = arith.constant 0 : i32
    %c0_i32_0 = arith.constant 0 : i32
    %c0_i32_1 = arith.constant 0 : i32
    return %c0_i32, %c0_i32_0, %arg0 : i32, i32, i32
  }
}

</mosaic_0001>

<bundles_post_ra>
// kernel: tpu_custom_call.1
= control target key start
LH: loop header
LB: loop body
LE: loop exit
PB: predicated region body
PF: predicated region fallthrough
CT: control target
= control target key end

     0   :  { %13 = vsyncpa [#allocation3], 0  ;;  %s743_s0 = inlined_call_operand.hbm [shape: f32[4,128], index: 0, kind: input, shape index: {}]   ;;  %s744_s1 = inlined_call_operand.hbm [shape: f32[4,4,128], index: 1, kind: input, shape index: {}]   ;;  %s745_s2 = inlined_call_operand.hbm [shape: f32[8,4,128], index: 2, kind: input, shape index: {}]   ;;  %s746_s3 = inlined_call_operand.vmem [shape: f32[8,128], index: 3, kind: input, shape index: {}]   ;;  %s747_s4 = inlined_call_operand.hbm [shape: f32[4,128], index: 4, kind: output, shape index: {0}]   ;;  %s748_s5 = inlined_call_operand.hbm [shape: s8[4,128], index: 5, kind: output, shape index: {1}]   ;;  %s749_s6 = inlined_call_operand.hbm [shape: f32[4,4,128], index: 6, kind: output, shape index: {2}]   ;;  %s750_s7 = inlined_call_operand.hbm [shape: f32[8,4,128], index: 7, kind: output, shape index: {3}]  }
   0x1   :  { %14 = vsyncpa [#allocation6], 0 }
   0x2   :  { %15 = vsyncpa [#allocation4], 0 }
   0x3   :  { %16 = vsyncpa [#allocation10], 0 }
   0x4   :  { %17 = vsyncpa [#allocation13], 0  ;;  %s513_s24 = smov [#allocation5]   ;;  %s349_s28 = scalar_lea.hbm %s744_s1, 256 }
   0x5   :  { %s33_s25 = sshll.u32 %s513_s24, 4  ;;  %p350_p0 = scmp.ne.s32.totalorder %s744_s1, %s349_s28  ;;  %s34_s25 = int_to_ptr.vmem [resolvable:$true] %s33_s25 }
   0x6   :  { %p353_p1 = scmp.lt.u32.totalorder %s349_s28, %s744_s1 }
   0x8   :  { %p355_p2 = pnand %p353_p1, %p350_p0 }
   0xa   :  { %358 = shalt.err (!%p355_p2)
}
   0xb   :  { %s359_s10 = scalar_lea.vmem %s34_s25, 256  ;;  %p364_p4 = scmp.lt.s32.totalorder %s34_s25, %s34_s25 }
   0xc   :  { %p360_p3 = scmp.ne.s32.totalorder %s34_s25, %s359_s10  ;;  %p365_p5 = scmp.lt.s32.totalorder %s359_s10, %s359_s10 }
   0xe   :  { %p366_p6 = por %p365_p5, %p364_p4 }
  0x10   :  { %p367_p7 = pnand %p366_p6, %p360_p3 }
  0x12   :  { %370 = shalt.err (!%p367_p7)
}
  0x13   :  { %s514_s11 = smov 64   ;;  %s515_s12 = smov 4  }
  0x14   :  { %39 = dma.hbm_to_vmem [thread:$0]  %s744_s1, 256, %s34_s25, [#allocation6], %s514_s11, %s514_s11, %s515_s12  }
  0x15   :  { %s516_s15 = smov [#allocation2]   ;;  %s517_s17 = smov [#allocation7]  }
  0x16   :  { %s24_s16 = sshll.u32 %s516_s15, 4  ;;  %s45_s18 = sshll.u32 %s517_s17, 4  ;;  %s25_s16 = int_to_ptr.vmem [resolvable:$true] %s24_s16  ;;  %s46_s18 = int_to_ptr.vmem [resolvable:$true] %s45_s18 }
  0x17   :  { %s371_s21 = scalar_lea.hbm %s743_s0, 64 }
  0x18   :  { %p372_p8 = scmp.ne.s32.totalorder %s743_s0, %s371_s21  ;;  %p375_p9 = scmp.lt.u32.totalorder %s371_s21, %s743_s0 }
  0x1a   :  { %p377_p10 = pnand %p375_p9, %p372_p8 }
  0x1c   :  { %380 = shalt.err (!%p377_p10)
}
  0x1d   :  { %s381_s1 = scalar_lea.vmem %s25_s16, 64  ;;  %p386_p12 = scmp.lt.s32.totalorder %s25_s16, %s25_s16 }
  0x1e   :  { %p382_p11 = scmp.ne.s32.totalorder %s25_s16, %s381_s1  ;;  %p387_p13 = scmp.lt.s32.totalorder %s381_s1, %s381_s1 }
  0x20   :  { %p388_p0 = por %p387_p13, %p386_p12 }
  0x22   :  { %p389_p1 = pnand %p388_p0, %p382_p11 }
  0x24   :  { %392 = shalt.err (!%p389_p1)
}
  0x25   :  { %27 = dma.hbm_to_vmem [thread:$0]  %s743_s0, 64, %s25_s16, [#allocation3]  }
  0x26   :  { %s393_s30 = scalar_lea.hbm %s745_s2, 512 }
  0x27   :  { %p394_p2 = scmp.ne.s32.totalorder %s745_s2, %s393_s30  ;;  %p397_p3 = scmp.lt.u32.totalorder %s393_s30, %s745_s2 }
  0x29   :  { %p399_p4 = pnand %p397_p3, %p394_p2 }
  0x2b   :  { %402 = shalt.err (!%p399_p4)
}
  0x2c   :  { %s403_s14 = scalar_lea.vmem %s46_s18, 512  ;;  %p408_p6 = scmp.lt.s32.totalorder %s46_s18, %s46_s18 }
  0x2d   :  { %p404_p5 = scmp.ne.s32.totalorder %s46_s18, %s403_s14  ;;  %p409_p7 = scmp.lt.s32.totalorder %s403_s14, %s403_s14 }
  0x2f   :  { %p410_p8 = por %p409_p7, %p408_p6 }
  0x31   :  { %p411_p9 = pnand %p410_p8, %p404_p5 }
  0x33   :  { %414 = shalt.err (!%p411_p9)
}
  0x34   :  { %51 = dma.hbm_to_vmem [thread:$0]  %s745_s2, 512, %s46_s18, [#allocation6], %s514_s11, %s514_s11, %s515_s12  }
  0x35   :  { %503 = dma.done.wait [#allocation3], 64  }
  0x36   :  { %504 = vsyncadd [#allocation3], 4294967232 }
  0x37   :  { %505 = dma.done.wait [#allocation6], 768  }
  0x38   :  { %506 = vsyncadd [#allocation6], 4294966528  ;;  %v87_v0 = vlaneseq  ;;  %vm66_vm0 = vcmask 1043456   ;;  %v607_v2 = vld [vmem:[#allocation2] sm:$0xf] }
  0x39   :  { %v96_v3 = vld [vmem:[%s746_s3] sm:$0x1]  ;;  %v98_v4 = vld [vmem:[%s746_s3 + $0x2] sm:$0x1]  ;;  %v67_v5 = vsel %vm66_vm0, %v607_v2, -inf }
  0x3a   :  { %v605_v1 = vshrl.u32 %v87_v0, 7  ;;  %v100_v6 = vld [vmem:[%s746_s3 + $0x4] sm:$0x1]  ;;  %v102_v7 = vsub.f32 %v98_v4, %v96_v3  ;;  %v68_v8 = vrot.slane %v67_v5, 4  ;;  %v138_v10 = vld [vmem:[#allocation5 + $0x8] sm:$0xf] }
  0x3b   :  { %v97_v11 = vld [vmem:[%s746_s3 + $0x1] sm:$0x1]  ;;  %v327_v13 = vadd.f32 -1.0, %v100_v6  ;;  %v139_v14 = vmul.f32 0.2, %v138_v10 }
  0x3c   :  { %v621_v9 = vsub.s32 0, %v605_v1  ;;  %v103_v12 = vadd.f32 1.0, %v102_v7  ;;  %v99_v15 = vld [vmem:[%s746_s3 + $0x3] sm:$0x1]  ;;  %v69_v16 = vmax.f32 %v67_v5, %v68_v8  ;;  %v114_v17 = vld [vmem:[#allocation5] sm:$0xf] }
  0x3d   :  { %v101_v18 = vld [vmem:[%s746_s3 + $0x5] sm:$0x1]  ;;  %v104_v19 = vsub.f32 %v99_v15, %v97_v11  ;;  %v142_v20 = vld [vmem:[#allocation5 + $0xc] sm:$0xf]  ;;  %v140_v25 = vmin.f32 %v139_v14, 4.1351666 }
  0x3e   :  { %v633_v21 = vrot.slane %v96_v3, %v621_v9  ;;  %v216_v22 = vrot.slane %v98_v4, %v621_v9  ;;  %v636_v23 = vmul.f32 0.5, %v103_v12  ;;  %v112_v24 = vmul.f32 0.1, %v103_v12  ;;  %v188_v35 = vld [vmem:[#allocation7] sm:$0xf]  ;;  %s518_s3 = smov [#allocation12]  }
  0x3f   :  { %v204_v26 = vrot.slane %v97_v11, %v621_v9  ;;  %v70_v27 = vrot.slane %v69_v16, 2  ;;  %v105_v28 = vadd.f32 1.0, %v104_v19  ;;  %v328_v29 = vadd.f32 -1.0, %v101_v18  ;;  %v211_v36 = vld [vmem:[#allocation7 + $0x8] sm:$0xf]  ;;  %s303_s25 = sshll.u32 %s518_s3, 4  ;;  %s304_s25 = int_to_ptr.vmem [resolvable:$true] %s303_s25 }
  0x40   :  { %v143_v30 = vmul.f32 0.2, %v142_v20  ;;  %v107_v31 = vadd.f32 %v636_v23, %v96_v3  ;;  %v118_v32 = vrot.slane %v112_v24, %v621_v9  ;;  %v145_v33 = vmul.f32 1.442695, %v140_v25  ;;  %v126_v43 = vld [vmem:[#allocation5 + $0x4] sm:$0xf]  ;;  %p420_p11 = scmp.lt.s32.totalorder %s304_s25, %s304_s25 }
  0x41   :  { %v642_v34 = vrot.slane %v327_v13, %v621_v9  ;;  %v71_v37 = vmax.f32 %v69_v16, %v70_v27  ;;  %v644_v38 = vmul.f32 0.5, %v105_v28  ;;  %v113_v39 = vmul.f32 0.1, %v105_v28  ;;  %v199_v44 = vld [vmem:[#allocation7 + $0x4] sm:$0xf]  ;;  %s415_s27 = scalar_lea.vmem %s304_s25, 512 }
  0x42   :  { %v144_v40 = vmin.f32 %v143_v30, 4.1351666  ;;  %v119_v41 = vmul.f32 %v118_v32, %v114_v17  ;;  %v123_v42 = vrot.slane %v107_v31, %v621_v9  ;;  %341 = vpow2.f32 %v145_v33  ;;  %v223_v50 = vld [vmem:[#allocation7 + $0xc] sm:$0xf]  ;;  %v231_v55 = vld [vmem:[#allocation7 + $0x10] sm:$0xf]  ;;  %p416_p10 = scmp.ne.s32.totalorder %s304_s25, %s415_s27  ;;  %p421_p12 = scmp.lt.s32.totalorder %s415_s27, %s415_s27 }
  0x43   :  { %v244_v45 = vrot.slane %v99_v15, %v621_v9  ;;  %v72_v46 = vrot.slane %v71_v37, 1  ;;  %v109_v47 = vadd.f32 %v644_v38, %v97_v11  ;;  %v130_v48 = vrot.slane %v113_v39, %v621_v9  ;;  %v239_v56 = vld [vmem:[#allocation7 + $0x14] sm:$0xf]  ;;  %v251_v0 = vld [vmem:[#allocation7 + $0x18] sm:$0xf] }
  0x44   :  { %v152_v49 = vmul.f32 1.442695, %v144_v40  ;;  %v150_v51 = vrot.slane %v636_v23, %v621_v9  ;;  %v653_v52 = vrot.slane %v328_v29, %v621_v9  ;;  %v189_v53 = vmul.f32 %v188_v35, %v118_v32  ;;  %v259_v16 = vld [vmem:[#allocation7 + $0x1c] sm:$0xf]  ;;  %p422_p13 = por %p421_p12, %p420_p11 }
  0x45   :  { %v212_v54 = vmul.f32 %v211_v36, %v118_v32  ;;  %v73_v57 = vmax.f32 %v71_v37, %v72_v46  ;;  %v124_v58 = vadd.f32 %v123_v42, %v119_v41  ;;  %v131_v59 = vmul.f32 %v130_v48, %v126_v43 }
  0x46   :  { %343 = vpow2.f32 %v152_v49  ;;  %v194_v60 = vadd.f32 %v633_v21, %v189_v53  ;;  %v200_v61 = vmul.f32 %v199_v44, %v130_v48  ;;  %v224_v63 = vmul.f32 %v223_v50, %v130_v48  ;;  %p423_p0 = pnand %p422_p13, %p416_p10 }
  0x47   :  { %v217_v62 = vadd.f32 %v216_v22, %v212_v54  ;;  %v74_v3 = vsub.f32 %v607_v2, %v73_v57  ;;  %v135_v4 = vrot.slane %v109_v47, %v621_v9  ;;  %v232_v5 = vmul.f32 %v231_v55, %v118_v32 }
  0x48   :  { %v240_v6 = vmul.f32 %v239_v56, %v130_v48  ;;  %v195_v7 = vmax.f32 %v194_v60, 0.0  ;;  %v205_v8 = vadd.f32 %v204_v26, %v200_v61  ;;  %v225_v11 = vadd.f32 %v224_v63, %v204_v26 }
  0x49   :  { %v218_v10 = vmax.f32 %v217_v62, 0.0  ;;  %v75_v12 = vmul.f32 1.442695, %v74_v3  ;;  %v233_v13 = vadd.f32 %v232_v5, %v216_v22  ;;  %v252_v15 = vmul.f32 %v251_v0, %v118_v32 }
  0x4a   :  { %v245_v14 = vadd.f32 %v244_v45, %v240_v6  ;;  %v196_v17 = vmin.f32 %v642_v34, %v195_v7  ;;  %v206_v18 = vmax.f32 %v205_v8, 0.0  ;;  %v226_v20 = vmax.f32 %v225_v11, 0.0 }
  0x4b   :  { %v219_v19 = vmin.f32 %v642_v34, %v218_v10  ;;  %345 = vpow2.f32 %v75_v12  ;;  %v234_v2 = vmax.f32 %v233_v13, 0.0  ;;  %v253_v24 = vadd.f32 %v252_v15, %v633_v21 }
  0x4c   :  { %v246_v23 = vmax.f32 %v245_v14, 0.0  ;;  %v342_v25 = vpop.eup %341  ;;  %v157_v26 = vrot.slane %v644_v38, %v621_v9  ;;  %197 = vst [vmem:[#allocation12] sm:$0xf] %v196_v17  ;;  %v207_v22 = vmin.f32 %v653_v52, %v206_v18  ;;  %v227_v27 = vmin.f32 %v653_v52, %v226_v20 }
  0x4d   :  { %221 = vst [vmem:[#allocation12 + $0x8] sm:$0xf] %v219_v19  ;;  %v260_v28 = vmul.f32 %v259_v16, %v130_v48  ;;  %v151_v29 = vmul.f32 %v342_v25, %v150_v51  ;;  %v235_v30 = vmin.f32 %v642_v34, %v234_v2  ;;  %v254_v32 = vmax.f32 %v253_v24, 0.0 }
  0x4e   :  { %v247_v31 = vmin.f32 %v653_v52, %v246_v23  ;;  %v136_v33 = vadd.f32 %v135_v4, %v131_v59  ;;  %209 = vst [vmem:[#allocation12 + $0x4] sm:$0xf] %v207_v22  ;;  %229 = vst [vmem:[#allocation12 + $0xc] sm:$0xf] %v227_v27 }
  0x4f   :  { %v261_v21 = vadd.f32 %v260_v28, %v244_v45  ;;  %v159_v36 = vsub.f32 %v124_v58, %v151_v29  ;;  %v176_v9 = vadd.f32 %v151_v29, %v124_v58  ;;  %237 = vst [vmem:[#allocation12 + $0x10] sm:$0xf] %v235_v30  ;;  %v255_v37 = vmin.f32 %v642_v34, %v254_v32 }
  0x50   :  { %v344_v35 = vpop.eup %343  ;;  %249 = vst [vmem:[#allocation12 + $0x14] sm:$0xf] %v247_v31 }
  0x51   :  { %v158_v38 = vmul.f32 %v344_v35, %v157_v26  ;;  %v262_v39 = vmax.f32 %v261_v21, 0.0  ;;  %v160_v40 = vmax.f32 %v159_v36, 0.0  ;;  %v329_v41 = vadd.f32 -1.0, %v176_v9  ;;  %257 = vst [vmem:[#allocation12 + $0x18] sm:$0xf] %v255_v37 }
  0x53   :  { %v167_v42 = vsub.f32 %v136_v33, %v158_v38  ;;  %v182_v43 = vadd.f32 %v158_v38, %v136_v33  ;;  %v263_v44 = vmin.f32 %v653_v52, %v262_v39  ;;  %v165_v45 = vmin.f32 %v642_v34, %v160_v40 }
  0x54   :  { %v178_v46 = vmax.f32 %v329_v41, 0.0 }
  0x55   :  { %v168_v47 = vmax.f32 %v167_v42, 0.0  ;;  %v330_v48 = vadd.f32 -1.0, %v182_v43  ;;  %265 = vst [vmem:[#allocation12 + $0x1c] sm:$0xf] %v263_v44  ;;  %v346_v49 = vpop.eup %345  ;;  %166 = vst [vmem:[#allocation11] sm:$0xf] %v165_v45 }
  0x56   :  { %v179_v50 = vmin.f32 %v642_v34, %v178_v46 }
  0x57   :  { %426 = shalt.err (!%p423_p0)
}
  0x58   :  { %s427_s30 = scalar_lea.hbm %s750_s7, 512 }
  0x59   :  { %p428_p1 = scmp.ne.s32.totalorder %s750_s7, %s427_s30  ;;  %p431_p2 = scmp.lt.u32.totalorder %s427_s30, %s750_s7 }
  0x5b   :  { %p433_p3 = pnand %p431_p2, %p428_p1 }
  0x5d   :  { %436 = shalt.err (!%p433_p3)
}
  0x5e   :  { %309 = dma.vmem_to_hbm [thread:$0]  %s304_s25, 512, %s750_s7, [#allocation13], %s514_s11, %s514_s11, %s515_s12   ;;  %v77_v34 = vsel %vm66_vm0, %v346_v49, 0.0  ;;  %v173_v51 = vmin.f32 %v653_v52, %v168_v47  ;;  %v184_v53 = vmax.f32 %v330_v48, 0.0  ;;  %181 = vst [vmem:[#allocation11 + $0x8] sm:$0xf] %v179_v50 }
  0x5f   :  { %v78_v54 = vrot.slane %v77_v34, 4  ;;  %s519_s15 = smov [#allocation8]   ;;  %vm90_vm1 = vcmp.gt.s32.totalorder %v605_v1, 0  ;;  %s520_s7 = smov [#allocation9]  }
  0x60   :  { %175 = vst [vmem:[#allocation11 + $0x4] sm:$0xf] %v173_v51  ;;  %v185_v55 = vmin.f32 %v653_v52, %v184_v53  ;;  %s272_s16 = sshll.u32 %s519_s15, 4  ;;  %s282_s17 = sshll.u32 %s520_s7, 4  ;;  %s273_s16 = int_to_ptr.vmem [resolvable:$true] %s272_s16  ;;  %s283_s17 = int_to_ptr.vmem [resolvable:$true] %s282_s17 }
  0x61   :  { %v79_v56 = vadd.f32 %v78_v54, %v77_v34  ;;  %s521_s19 = smov [#allocation11]   ;;  %s437_s2 = scalar_lea.vmem %s273_s16, 64 }
  0x62   :  { %187 = vst [vmem:[#allocation11 + $0xc] sm:$0xf] %v185_v55  ;;  %s291_s20 = sshll.u32 %s521_s19, 4  ;;  %p438_p4 = scmp.ne.s32.totalorder %s273_s16, %s437_s2  ;;  %s709_s20 = int_to_ptr.vmem [resolvable:$true] %s291_s20 }
  0x63   :  { %v80_v57 = vrot.slane %v79_v56, 2  ;;  %p442_p5 = scmp.lt.s32.totalorder %s273_s16, %s273_s16  ;;  %p443_p6 = scmp.lt.s32.totalorder %s437_s2, %s437_s2 }
  0x65   :  { %v81_v58 = vadd.f32 %v80_v57, %v79_v56  ;;  %p444_p7 = por %p443_p6, %p442_p5 }
  0x67   :  { %v82_v59 = vrot.slane %v81_v58, 1  ;;  %p445_p8 = pnand %p444_p7, %p438_p4 }
  0x69   :  { %v83_v60 = vadd.f32 %v82_v59, %v81_v58 }
  0x6b   :  { %347 = vrcp.f32 %v83_v60 }
  0x75   :  { %v348_v61 = vpop.eup %347 }
  0x76   :  { %v85_v62 = vmul.f32 %v348_v61, %v346_v49 }
  0x78   :  { %vm89_vm2 = vcmp.gt.f32.partialorder %v85_v62, 0.05  ;;  %86 = vst [vmem:[#allocation8] sm:$0xf] %v85_v62 }
  0x79   :  { %vm690_vm3 = vmand %vm89_vm2, %vm90_vm1 }
  0x7a   :  { %448 = shalt.err (!%p445_p8)
}
  0x7b   :  { %s449_s22 = scalar_lea.hbm %s747_s4, 64 }
  0x7c   :  { %p450_p9 = scmp.ne.s32.totalorder %s747_s4, %s449_s22  ;;  %p453_p10 = scmp.lt.u32.totalorder %s449_s22, %s747_s4 }
  0x7e   :  { %p455_p11 = pnand %p453_p10, %p450_p9 }
  0x80   :  { %458 = shalt.err (!%p455_p11)
}
  0x81   :  { %275 = dma.vmem_to_hbm [thread:$0]  %s273_s16, 64, %s747_s4, [#allocation4]   ;;  %vm92_vm4 = vmpackc.low %vm690_vm3, %vm690_vm3  ;;  %v522_v1 = vmov 0  }
  0x82   :  { %vm93_vm5 = vmpackc.even %vm92_vm4, %vm92_vm4  ;;  %s459_s27 = scalar_lea.vmem %s283_s17, 16  ;;  %s463_s28 = scalar_lea.vmem %s283_s17, 32 }
  0x83   :  { %v94_v63 = vsel %vm93_vm5, 16843009, %v522_v1  ;;  %p460_p12 = scmp.ne.s32.totalorder %s283_s17, %s459_s27  ;;  %p464_p13 = scmp.lt.s32.totalorder %s283_s17, %s283_s17 }
  0x84   :  { %95 = vst [vmem:[#allocation9] sm:$0x1] %v94_v63  ;;  %p465_p0 = scmp.lt.s32.totalorder %s463_s28, %s459_s27 }
  0x86   :  { %p466_p1 = por %p465_p0, %p464_p13 }
  0x88   :  { %p467_p2 = pnand %p466_p1, %p460_p12 }
  0x8a   :  { %470 = shalt.err (!%p467_p2)
}
  0x8b   :  { %s471_s30 = scalar_lea.hbm %s748_s5, 16 }
  0x8c   :  { %p472_p3 = scmp.ne.s32.totalorder %s748_s5, %s471_s30  ;;  %p475_p4 = scmp.lt.u32.totalorder %s471_s30, %s748_s5 }
  0x8e   :  { %p477_p5 = pnand %p475_p4, %p472_p3 }
  0x90   :  { %480 = shalt.err (!%p477_p5)
}
  0x91   :  { %285 = dma.vmem_to_hbm [thread:$0]  %s283_s17, 16, %s748_s5, [#allocation10]  }
  0x92   :  { %s481_s15 = scalar_lea.vmem %s709_s20, 256  ;;  %p486_p7 = scmp.lt.s32.totalorder %s709_s20, %s709_s20 }
  0x93   :  { %p482_p6 = scmp.ne.s32.totalorder %s709_s20, %s481_s15  ;;  %p487_p8 = scmp.lt.s32.totalorder %s481_s15, %s481_s15 }
  0x95   :  { %p488_p9 = por %p487_p8, %p486_p7 }
  0x97   :  { %p489_p10 = pnand %p488_p9, %p482_p6 }
  0x99   :  { %492 = shalt.err (!%p489_p10)
}
  0x9a   :  { %s493_s19 = scalar_lea.hbm %s749_s6, 256 }
  0x9b   :  { %p494_p11 = scmp.ne.s32.totalorder %s749_s6, %s493_s19  ;;  %p497_p12 = scmp.lt.u32.totalorder %s493_s19, %s749_s6 }
  0x9d   :  { %p499_p13 = pnand %p497_p12, %p494_p11 }
  0x9f   :  { %502 = shalt.err (!%p499_p13)
}
  0xa0   :  { %297 = dma.vmem_to_hbm [thread:$0]  %s709_s20, 256, %s749_s6, [#allocation10], %s514_s11, %s514_s11, %s515_s12  }
  0xa1   :  { %507 = dma.done.wait [#allocation4], 64  }
  0xa2   :  { %508 = vsyncadd [#allocation4], 4294967232 }
  0xa3   :  { %509 = dma.done.wait [#allocation10], 272  }
  0xa4   :  { %510 = vsyncadd [#allocation10], 4294967024 }
  0xa5   :  { %511 = dma.done.wait [#allocation13], 512  }
  0xa6   :  { %512 = vsyncadd [#allocation13], 4294966784 }
  0xa7   :  { %322 = vsyncpa [#allocation3], 1 }
  0xa8   :  { %323 = vsyncpa [#allocation6], 1 }
  0xa9   :  { %324 = vsyncpa [#allocation4], 1 }
  0xaa   :  { %325 = vsyncpa [#allocation10], 1 }
  0xab   :  { %326 = vsyncpa [#allocation13], 1 }

</bundles_post_ra>
